<compile_context>
chip_gen: v5e
topology: v5e:2x2
jax: 0.10.0
libtpu: 0.0.40
codegen_flags: <defaults>
</compile_context>

<pallas_src>
import functools
import math

import jax
import jax.numpy as jnp
from jax.experimental import pallas as pl
from jax.experimental.pallas import tpu as pltpu


def _attention_kernel(x_ref, w1_ref, b1_ref, w2_ref, b2_ref, a_ref):
    # [TILE_N, L] bf16 @ [L, D] bf16 -> f32 accumulation on the MXU.
    h = jnp.dot(x_ref[...], w1_ref[...], preferred_element_type=jnp.float32)
    h = jnp.tanh(h + b1_ref[...])                       # f32 bias + tanh (EUP)
    # [TILE_N, D] f32 @ [D, K] f32 -> f32 (K is tiny; MXU has plenty of slack).
    a = jnp.dot(h, w2_ref[...], preferred_element_type=jnp.float32)
    a_ref[...] = (a + b2_ref[...]).astype(a_ref.dtype)


def _round_up(x, m):
    return ((x + m - 1) // m) * m


@functools.partial(jax.jit, static_argnames=("tile_n",))
def abmil_attention(x, w1, b1, w2, b2, *, tile_n=512):
    """x: [1, N, L] (or [N, L]); returns (A: [N, K] f32, x_sq: [N, L])."""
    x_sq = x[0] if x.ndim == 3 else x                    # squeeze(0)
    N, L = x_sq.shape
    D = w1.shape[1]
    K = w2.shape[1]

    # bf16 for the bandwidth-heavy first-matmul operands; math stays f32.
    x_bf = x_sq.astype(jnp.bfloat16)
    w1_bf = w1.astype(jnp.bfloat16)
    b1_f = b1.reshape(1, D).astype(jnp.float32)
    w2_f = w2.astype(jnp.float32)
    b2_f = b2.reshape(1, K).astype(jnp.float32)

    # Row tile: multiple of 8 (f32 sublanes), no larger than the padded bag.
    tn = _round_up(min(tile_n, _round_up(N, 8)), 8)
    n_pad = _round_up(N, tn)
    if n_pad != N:
        x_bf = jnp.pad(x_bf, ((0, n_pad - N), (0, 0)))
    grid = (n_pad // tn,)

    # Double buffers for the pipelined operands + resident weights + headroom.
    vmem_bytes = (
        2 * (tn * L * 2)                                  # x tile (bf16), 2 bufs
        + 2 * (tn * max(K, 128) * 4)                      # A tile (f32, lane-padded)
        + 2 * (L * D * 2 + 8 * 128 * 4                    # w1 + b1 (padded)
               + D * max(K, 128) * 4 + 8 * 128 * 4)       # w2 + b2 (padded)
        + (4 << 20)                                       # headroom
    )
    vmem_bytes = int(min(max(vmem_bytes, 8 << 20), 64 << 20))

    a = pl.pallas_call(
        _attention_kernel,
        out_shape=jax.ShapeDtypeStruct((n_pad, K), jnp.float32),
        grid_spec=pltpu.PrefetchScalarGridSpec(
            num_scalar_prefetch=0,
            grid=grid,
            in_specs=[
                pl.BlockSpec((tn, L), lambda i: (i, 0)),   # streamed x tiles
                pl.BlockSpec((L, D), lambda i: (0, 0)),    # VMEM-resident weights
                pl.BlockSpec((1, D), lambda i: (0, 0)),
                pl.BlockSpec((D, K), lambda i: (0, 0)),
                pl.BlockSpec((1, K), lambda i: (0, 0)),
            ],
            out_specs=pl.BlockSpec((tn, K), lambda i: (i, 0)),
        ),
        compiler_params=pltpu.CompilerParams(
            dimension_semantics=("parallel",),             # rows independent
            vmem_limit_bytes=vmem_bytes,
        ),
    )(x_bf, w1_bf, b1_f, w2_f, b2_f)

    return a[:N], x_sq


def compute_agg(A, x):
    # The PyTorch module does torch.mm(A, x) with A:[N,K], x:[N,L], which is
    # shape-inconsistent unless K == N; the intended ABMIL aggregation is
    # A.T @ x -> [K, L].  Output is tiny, so plain JAX is fine here.
    # TODO(synk): mirror the literal torch.mm(A, x) only if callers pass a
    # pre-transposed A.
    return jnp.matmul(A.T, x)


if __name__ == "__main__":
    # Module-consistent shapes: L=1024, D=128, K=n_labels=4; small bag N=512
    # so the grid has 4 pipelined row tiles with tile_n=128.
    N, L, D, K = 512, 1024, 128, 4

    key = jax.random.PRNGKey(0)
    kx, kw1, kb1, kw2, kb2 = jax.random.split(key, 5)

    x = jax.random.normal(kx, (1, N, L), dtype=jnp.float32)
    # Deterministic synthetic parameters (stored [in, out]).
    w1 = jax.random.normal(kw1, (L, D), dtype=jnp.float32) * (1.0 / math.sqrt(L))
    b1 = jax.random.normal(kb1, (1, D), dtype=jnp.float32) * 0.01
    w2 = jax.random.normal(kw2, (D, K), dtype=jnp.float32) * (1.0 / math.sqrt(D))
    b2 = jax.random.normal(kb2, (1, K), dtype=jnp.float32) * 0.01

    A, x_out = abmil_attention(x, w1, b1, w2, b2, tile_n=128)
    jax.block_until_ready((A, x_out))

    # Plain-JAX f32 reference; bf16 x/w1 in the kernel -> loose tolerance.
    x_sq = x[0]
    A_ref = jnp.tanh(x_sq @ w1 + b1) @ w2 + b2
    assert A.shape == (N, K) and x_out.shape == (N, L)
    assert jnp.allclose(A, A_ref, atol=5e-2, rtol=5e-2), float(
        jnp.max(jnp.abs(A - A_ref)))
    assert jnp.allclose(x_out, x_sq)

    agg = compute_agg(A, x_out)
    assert agg.shape == (K, L)

    print("KERNEL_OK")
</pallas_src>

<mosaic_0001>
module attributes {stable_mosaic.version = 11 : i64} {
  func.func @_attention_kernel(%arg0: i32, %arg1: memref<128x1024xbf16, #tpu.memory_space<vmem>>, %arg2: memref<1024x128xbf16, #tpu.memory_space<vmem>>, %arg3: memref<1x128xf32, #tpu.memory_space<vmem>>, %arg4: memref<128x4xf32, #tpu.memory_space<vmem>>, %arg5: memref<1x4xf32, #tpu.memory_space<vmem>>, %arg6: memref<128x4xf32, #tpu.memory_space<vmem>>) attributes {dimension_semantics = [#tpu.dimension_semantics<parallel>], iteration_bounds = array<i64: 4>, scalar_prefetch = 0 : i64, scratch_operands = 0 : i64, tpu.core_type = #tpu.core_type<tc>, window_params = [{transform_indices = @transform_0, window_bounds = array<i64: 128, 1024>}, {pipeline_mode = #tpu.pipeline_mode<synchronous>, transform_indices = @transform_1, window_bounds = array<i64: 1024, 128>}, {pipeline_mode = #tpu.pipeline_mode<synchronous>, transform_indices = @transform_2, window_bounds = array<i64: 1, 128>}, {pipeline_mode = #tpu.pipeline_mode<synchronous>, transform_indices = @transform_3, window_bounds = array<i64: 128, 4>}, {pipeline_mode = #tpu.pipeline_mode<synchronous>, transform_indices = @transform_4, window_bounds = array<i64: 1, 4>}, {transform_indices = @transform_5, window_bounds = array<i64: 128, 4>}]} {
    %c0 = arith.constant 0 : index
    %c0_0 = arith.constant 0 : index
    %0 = vector.load %arg1[%c0, %c0_0] : memref<128x1024xbf16, #tpu.memory_space<vmem>>, vector<128x1024xbf16>
    %c0_1 = arith.constant 0 : index
    %c0_2 = arith.constant 0 : index
    %1 = vector.load %arg2[%c0_1, %c0_2] : memref<1024x128xbf16, #tpu.memory_space<vmem>>, vector<1024x128xbf16>
    %cst = arith.constant dense<0.000000e+00> : vector<128x128xf32>
    %2 = tpu.matmul %0, %1, %cst {dimension_numbers = #tpu.dot_dimension_numbers<[1], [0], [0], [1], [0, 0, 1, 1], [], []>} : vector<128x1024xbf16>, vector<1024x128xbf16>, vector<128x128xf32> -> vector<128x128xf32>
    %c0_3 = arith.constant 0 : index
    %c0_4 = arith.constant 0 : index
    %3 = vector.load %arg3[%c0_3, %c0_4] : memref<1x128xf32, #tpu.memory_space<vmem>>, vector<1x128xf32>
    %4 = vector.broadcast %3 : vector<1x128xf32> to vector<128x128xf32>
    %5 = arith.addf %2, %4 : vector<128x128xf32>
    %6 = math.tanh %5 : vector<128x128xf32>
    %c0_5 = arith.constant 0 : index
    %c0_6 = arith.constant 0 : index
    %7 = vector.load %arg4[%c0_5, %c0_6] : memref<128x4xf32, #tpu.memory_space<vmem>>, vector<128x4xf32>
    %cst_7 = arith.constant dense<0.000000e+00> : vector<128x4xf32>
    %8 = tpu.matmul %6, %7, %cst_7 {dimension_numbers = #tpu.dot_dimension_numbers<[1], [0], [0], [1], [0, 0, 1, 1], [], []>} : vector<128x128xf32>, vector<128x4xf32>, vector<128x4xf32> -> vector<128x4xf32>
    %c0_8 = arith.constant 0 : index
    %c0_9 = arith.constant 0 : index
    %9 = vector.load %arg5[%c0_8, %c0_9] : memref<1x4xf32, #tpu.memory_space<vmem>>, vector<1x4xf32>
    %10 = vector.broadcast %9 : vector<1x4xf32> to vector<128x4xf32>
    %11 = arith.addf %8, %10 : vector<128x4xf32>
    %c0_10 = arith.constant 0 : index
    %c0_11 = arith.constant 0 : index
    %12 = vector.load %arg6[%c0_10, %c0_11] : memref<128x4xf32, #tpu.memory_space<vmem>>, vector<128x4xf32>
    tpu.vector_store %arg6[%c0_10, %c0_11], %11 {strides = array<i32>} : memref<128x4xf32, #tpu.memory_space<vmem>>, vector<128x4xf32>,
    return
  }
  func.func @transform_0(%arg0: i32) -> (i32, i32) {
    %c0_i32 = arith.constant 0 : i32
    %c0_i32_0 = arith.constant 0 : i32
    return %arg0, %c0_i32 : i32, i32
  }
  func.func @transform_1(%arg0: i32) -> (i32, i32) {
    %c0_i32 = arith.constant 0 : i32
    %c0_i32_0 = arith.constant 0 : i32
    %c0_i32_1 = arith.constant 0 : i32
    return %c0_i32, %c0_i32_0 : i32, i32
  }
  func.func @transform_2(%arg0: i32) -> (i32, i32) {
    %c0_i32 = arith.constant 0 : i32
    %c0_i32_0 = arith.constant 0 : i32
    %c0_i32_1 = arith.constant 0 : i32
    return %c0_i32, %c0_i32_0 : i32, i32
  }
  func.func @transform_3(%arg0: i32) -> (i32, i32) {
    %c0_i32 = arith.constant 0 : i32
    %c0_i32_0 = arith.constant 0 : i32
    %c0_i32_1 = arith.constant 0 : i32
    return %c0_i32, %c0_i32_0 : i32, i32
  }
  func.func @transform_4(%arg0: i32) -> (i32, i32) {
    %c0_i32 = arith.constant 0 : i32
    %c0_i32_0 = arith.constant 0 : i32
    %c0_i32_1 = arith.constant 0 : i32
    return %c0_i32, %c0_i32_0 : i32, i32
  }
  func.func @transform_5(%arg0: i32) -> (i32, i32) {
    %c0_i32 = arith.constant 0 : i32
    %c0_i32_0 = arith.constant 0 : i32
    return %arg0, %c0_i32 : i32, i32
  }
}

</mosaic_0001>

<bundles_post_ra>
// kernel: abmil_attention.1
= control target key start
LH: loop header
LB: loop body
LE: loop exit
PB: predicated region body
PF: predicated region fallthrough
CT: control target
= control target key end

     0   :  { %s2454_s18 = smov 0   ;;  %s2987_s0 = inlined_call_operand.vmem [shape: bf16[512,1024], index: 0, kind: input, shape index: {}]   ;;  %s2988_s1 = inlined_call_operand.vmem [shape: bf16[1024,128], index: 1, kind: input, shape index: {}]   ;;  %s2989_s2 = inlined_call_operand.vmem [shape: f32[1,128], index: 2, kind: input, shape index: {}]   ;;  %s2990_s3 = inlined_call_operand.vmem [shape: f32[128,4], index: 3, kind: input, shape index: {}]   ;;  %s2991_s4 = inlined_call_operand.vmem [shape: f32[1,4], index: 4, kind: input, shape index: {}]   ;;  %s2992_s5 = inlined_call_operand.vmem [shape: f32[512,4], index: 5, kind: output, shape index: {}]  }
   0x1 LB: > { %s1697_s19 = sadd.s32 4294967295, %s2422_s18   ;;  %p1701_p0 = scmp.ge.s32.totalorder %s2422_s18, 1  ;;  %s2422_s18 = sphi %s2454_s18, %s15_s18  }
   0x2   : > { %p189_p1 = scmp.lt.s32.totalorder %s2422_s18, 5 }
   0x4   : > { %p190_p2 = pnand %p1701_p0, %p189_p1 }
   0x5   : > { %s1702_s26 = sshll.u32 (!%p190_p2), %s1697_s19, 4 }
   0x6   : > { %193 = sbr.rel (%p190_p2) target bundleno = 596 (0x254), region = 40  ;;  %p219_p3 = scmp.lt.s32.totalorder (!%p190_p2), %s1702_s26, 63 }
   0xb   : > { %v2293_v0 = vld [vmem:[%s2988_s1 + $0x38] sm:$0xff]  ;;  %v2292_v1 = vld [vmem:[%s2988_s1 + $0x30] sm:$0xff]  ;;  %v2291_v2 = vld [vmem:[%s2988_s1 + $0x28] sm:$0xff]  ;;  %s2994_s26 = smov (!%p219_p3, %s1702_s26), 63  ;;  %vm1624_vm0 = vcmask 31744  }
   0xc   : > { %2350 = vmatpush.bf16.msra.mxu1 %v2293_v0  ;;  %2351 = vmatpush.bf16.msra.mxu2 %v2293_v0  ;;  %v2290_v3 = vld [vmem:[%s2988_s1 + $0x20] sm:$0xff]  ;;  %v2289_v4 = vld [vmem:[%s2988_s1 + $0x18] sm:$0xff]  ;;  %v2288_v5 = vld [vmem:[%s2988_s1 + $0x10] sm:$0xff]  ;;  %s2221_s8 = sshll.u32 %s2994_s26, 5 }
   0xd   : > { %2352 = vmatpush.bf16.msra.mxu3 %v2293_v0  ;;  %1131 = vmatpush.bf16.msra.mxu0 %v2293_v0  ;;  %v2287_v6 = vld [vmem:[%s2988_s1 + $0x8] sm:$0xff]  ;;  %s2489_s13 = scalar_lea.vmem %s2987_s0, %s2221_s8  ;;  %v2286_v7 = vld [vmem:[%s2988_s1] sm:$0xff]  ;;  %v2309_v14 = vld [vmem:[%s2988_s1 + $0xb8] sm:$0xff] }
   0xe   : > { %v1773_v8 = vld [vmem:[%s2489_s13 + $0x80] sm:$0xf]  ;;  %v2301_v15 = vld [vmem:[%s2988_s1 + $0x78] sm:$0xff]  ;;  %v2308_v22 = vld [vmem:[%s2988_s1 + $0xb0] sm:$0xff] }
   0xf   : > { %v2242_v9 = vld [vmem:[%s2489_s13 + $0x9c] sm:$0xf0]  ;;  %v2317_v16 = vld [vmem:[%s2988_s1 + $0xf8] sm:$0xff]  ;;  %v2300_v24 = vld [vmem:[%s2988_s1 + $0x70] sm:$0xff] }
  0x10   : > { %2353 = vmatpush.bf16.msra.mxu1 %v2292_v1  ;;  %2354 = vmatpush.bf16.msra.mxu2 %v2292_v1  ;;  %v1837_v10 = vld [vmem:[%s2489_s13 + $0x100] sm:$0xf]  ;;  %v1774_v17 = vor.u32 %v2242_v9, %v1773_v8  ;;  %v2325_v23 = vld [vmem:[%s2988_s1 + $0x138] sm:$0xff]  ;;  %v2316_v25 = vld [vmem:[%s2988_s1 + $0xf0] sm:$0xff] }
  0x11   : > { %2355 = vmatpush.bf16.msra.mxu3 %v2292_v1  ;;  %1132 = vmatpush.bf16.msra.mxu0 %v2292_v1  ;;  %v2258_v11 = vld [vmem:[%s2489_s13 + $0x11c] sm:$0xf0]  ;;  %v2307_v27 = vld [vmem:[%s2988_s1 + $0xa8] sm:$0xff]  ;;  %v2324_v28 = vld [vmem:[%s2988_s1 + $0x130] sm:$0xff] }
  0x12   : > { %v1901_v12 = vld [vmem:[%s2489_s13 + $0x180] sm:$0xf]  ;;  %v1838_v18 = vor.u32 %v2258_v11, %v1837_v10  ;;  %v2299_v29 = vld [vmem:[%s2988_s1 + $0x68] sm:$0xff]  ;;  %v2305_v41 = vld [vmem:[%s2988_s1 + $0x98] sm:$0xff] }
  0x13   : > { %v2274_v13 = vld [vmem:[%s2489_s13 + $0x19c] sm:$0xf0]  ;;  %v2315_v30 = vld [vmem:[%s2988_s1 + $0xe8] sm:$0xff]  ;;  %v2297_v43 = vld [vmem:[%s2988_s1 + $0x58] sm:$0xff] }
  0x14   : > { %2356 = vmatpush.bf16.msra.mxu1 %v2291_v2  ;;  %2357 = vmatpush.bf16.msra.mxu2 %v2291_v2  ;;  %v1902_v19 = vor.u32 %v2274_v13, %v1901_v12  ;;  %v1709_v20 = vld [vmem:[%s2489_s13] sm:$0xf]  ;;  %v2323_v32 = vld [vmem:[%s2988_s1 + $0x128] sm:$0xff]  ;;  %v2313_v44 = vld [vmem:[%s2988_s1 + $0xd8] sm:$0xff] }
  0x15   : > { %2358 = vmatpush.bf16.msra.mxu3 %v2291_v2  ;;  %1133 = vmatpush.bf16.msra.mxu0 %v2291_v2  ;;  %v2226_v21 = vld [vmem:[%s2489_s13 + $0x1c] sm:$0xf0]  ;;  %v2304_v50 = vld [vmem:[%s2988_s1 + $0x90] sm:$0xff]  ;;  %v2321_v51 = vld [vmem:[%s2988_s1 + $0x118] sm:$0xff] }
  0x16   : > { %v1710_v26 = vor.u32 %v2226_v21, %v1709_v20  ;;  %v2306_v31 = vld [vmem:[%s2988_s1 + $0xa0] sm:$0xff]  ;;  %v2296_v52 = vld [vmem:[%s2988_s1 + $0x50] sm:$0xff]  ;;  %v2303_v55 = vld [vmem:[%s2988_s1 + $0x88] sm:$0xff] }
  0x17   : > { %v2298_v33 = vld [vmem:[%s2988_s1 + $0x60] sm:$0xff]  ;;  %v2312_v53 = vld [vmem:[%s2988_s1 + $0xd0] sm:$0xff]  ;;  %v2295_v57 = vld [vmem:[%s2988_s1 + $0x48] sm:$0xff] }
  0x18   : > { %2359 = vmatpush.bf16.msra.mxu1 %v2290_v3  ;;  %2360 = vmatpush.bf16.msra.mxu2 %v2290_v3  ;;  %v2314_v34 = vld [vmem:[%s2988_s1 + $0xe0] sm:$0xff]  ;;  %v2320_v56 = vld [vmem:[%s2988_s1 + $0x110] sm:$0xff]  ;;  %v2311_v58 = vld [vmem:[%s2988_s1 + $0xc8] sm:$0xff] }
  0x19   : > { %2361 = vmatpush.bf16.msra.mxu3 %v2290_v3  ;;  %1134 = vmatpush.bf16.msra.mxu0 %v2290_v3  ;;  %v1805_v35 = vld [vmem:[%s2489_s13 + $0xc0] sm:$0xf]  ;;  %v2319_v60 = vld [vmem:[%s2988_s1 + $0x108] sm:$0xff]  ;;  %v2222_v63 = vld [vmem:[%s2489_s13 + $0x4] sm:$0xf] }
  0x1a   : > { %v2250_v36 = vld [vmem:[%s2489_s13 + $0xdc] sm:$0xf0]  ;;  %v1711_v0 = vld [vmem:[%s2489_s13 + $0x20] sm:$0xf0]  ;;  %v2341_v1 = vld [vmem:[%s2988_s1 + $0x1b8] sm:$0xff] }
  0x1b   : > { %v1869_v37 = vld [vmem:[%s2489_s13 + $0x140] sm:$0xf]  ;;  %v1806_v45 = vor.u32 %v2250_v36, %v1805_v35  ;;  %v2349_v2 = vld [vmem:[%s2988_s1 + $0x1f8] sm:$0xff]  ;;  %v1717_v3 = vld [vmem:[%s2489_s13 + $0x8] sm:$0xf]  ;;  %v1714_v9 = vor.u32 %v2222_v63, %v1711_v0 }
  0x1c   : > { %2362 = vmatpush.bf16.msra.mxu1 %v2289_v4  ;;  %2363 = vmatpush.bf16.msra.mxu2 %v2289_v4  ;;  %v2266_v38 = vld [vmem:[%s2489_s13 + $0x15c] sm:$0xf0]  ;;  %v1725_v12 = vld [vmem:[%s2489_s13 + $0x10] sm:$0xf]  ;;  %v2331_v20 = vld [vmem:[%s2988_s1 + $0x168] sm:$0xff] }
  0x1d   : > { %2364 = vmatpush.bf16.msra.mxu3 %v2289_v4  ;;  %1135 = vmatpush.bf16.msra.mxu0 %v2289_v4  ;;  %v1933_v39 = vld [vmem:[%s2489_s13 + $0x1c0] sm:$0xf]  ;;  %v1870_v46 = vor.u32 %v2266_v38, %v1869_v37  ;;  %v2227_v4 = vld [vmem:[%s2489_s13 + $0x24] sm:$0xf0]  ;;  %v2228_v13 = vld [vmem:[%s2489_s13 + $0x2c] sm:$0xf0] }
  0x1e   : > { %v2282_v40 = vld [vmem:[%s2489_s13 + $0x1dc] sm:$0xf0]  ;;  %v1718_v10 = vor.u32 %v2227_v4, %v1717_v3  ;;  %v2230_v21 = vld [vmem:[%s2489_s13 + $0x44] sm:$0xf]  ;;  %v1781_v38 = vld [vmem:[%s2489_s13 + $0x88] sm:$0xf] }
  0x1f   : > { %v2322_v42 = vld [vmem:[%s2988_s1 + $0x120] sm:$0xff]  ;;  %v1934_v47 = vor.u32 %v2282_v40, %v1933_v39  ;;  %v2243_v39 = vld [vmem:[%s2489_s13 + $0xa4] sm:$0xf0]  ;;  %v2239_v40 = vld [vmem:[%s2489_s13 + $0x8c] sm:$0xf] }
  0x20   : > { %2365 = vmatpush.bf16.msra.mxu1 %v2288_v5  ;;  %2366 = vmatpush.bf16.msra.mxu2 %v2288_v5  ;;  %v1741_v48 = vld [vmem:[%s2489_s13 + $0x40] sm:$0xf]  ;;  %v2238_v36 = vld [vmem:[%s2489_s13 + $0x84] sm:$0xf]  ;;  %v2336_v63 = vld [vmem:[%s2988_s1 + $0x190] sm:$0xff] }
  0x21   : > { %2367 = vmatpush.bf16.msra.mxu3 %v2288_v5  ;;  %1136 = vmatpush.bf16.msra.mxu0 %v2288_v5  ;;  %v2234_v49 = vld [vmem:[%s2489_s13 + $0x5c] sm:$0xf0]  ;;  %v2333_v5 = vld [vmem:[%s2988_s1 + $0x178] sm:$0xff]  ;;  %v1775_v37 = vld [vmem:[%s2489_s13 + $0xa0] sm:$0xf0] }
  0x22   : > { %v1742_v54 = vor.u32 %v2234_v49, %v1741_v48  ;;  %v2302_v59 = vld [vmem:[%s2988_s1 + $0x80] sm:$0xff]  ;;  %v2337_v48 = vld [vmem:[%s2988_s1 + $0x198] sm:$0xff]  ;;  %v2344_v0 = vld [vmem:[%s2988_s1 + $0x1d0] sm:$0xff] }
  0x23   : > { %v2294_v61 = vld [vmem:[%s2988_s1 + $0x40] sm:$0xff]  ;;  %v2345_v49 = vld [vmem:[%s2988_s1 + $0x1d8] sm:$0xff]  ;;  %v1845_v4 = vld [vmem:[%s2489_s13 + $0x108] sm:$0xf] }
  0x24   : > { %2368 = vmatpush.bf16.msra.mxu1 %v2287_v6  ;;  %2369 = vmatpush.bf16.msra.mxu2 %v2287_v6  ;;  %v2310_v62 = vld [vmem:[%s2988_s1 + $0xc0] sm:$0xff] }
  0x25   : > { %2370 = vmatpush.bf16.msra.mxu3 %v2287_v6  ;;  %1137 = vmatpush.bf16.msra.mxu0 %v2287_v6  ;;  %v2223_v6 = vld [vmem:[%s2489_s13 + $0xc] sm:$0xf]  ;;  %v2318_v8 = vld [vmem:[%s2988_s1 + $0x100] sm:$0xff] }
  0x26   : > { %v2330_v35 = vld [vmem:[%s2988_s1 + $0x160] sm:$0xff] }
  0x27   : > { %v1839_v3 = vld [vmem:[%s2489_s13 + $0x120] sm:$0xf0] }
  0x28   : > { %2371 = vmatpush.bf16.msra.mxu1 %v2286_v7  ;;  %2372 = vmatpush.bf16.msra.mxu2 %v2286_v7 }
  0x29   : > { %2373 = vmatpush.bf16.msra.mxu3 %v2286_v7  ;;  %1138 = vmatpush.bf16.msra.mxu0 %v2286_v7  ;;  %v1719_v7 = vld [vmem:[%s2489_s13 + $0x28] sm:$0xf0] }
  0x2a   : > { %v1722_v11 = vor.u32 %v2223_v6, %v1719_v7  ;;  %v2255_v6 = vld [vmem:[%s2489_s13 + $0x10c] sm:$0xf] }
  0x2b   : > { %1149 = vmatmul.bf16.vlgmr.msra.gmra.mxu1 %v1774_v17  ;;  %1159 = vmatmul.bf16.vlgmr.msra.gmra.mxu2 %v1838_v18  ;;  %v1726_v17 = vor.u32 %v2228_v13, %v1725_v12  ;;  %v2339_v18 = vld [vmem:[%s2988_s1 + $0x1a8] sm:$0xff]  ;;  %v2260_v12 = vld [vmem:[%s2489_s13 + $0x12c] sm:$0xf0] }
  0x2c   : > { %1229 = vmatpush.bf16.msrb.mxu2 %v2309_v14  ;;  %1180 = vmatpush.bf16.msrb.mxu1 %v2301_v15  ;;  %v2340_v14 = vld [vmem:[%s2988_s1 + $0x1b0] sm:$0xff]  ;;  %v1847_v7 = vld [vmem:[%s2489_s13 + $0x128] sm:$0xf0] }
  0x2d   : > { %1278 = vmatpush.bf16.msrb.mxu3 %v2317_v16  ;;  %1327 = vmatpush.bf16.msrb.mxu0 %v2325_v23  ;;  %v2348_v15 = vld [vmem:[%s2988_s1 + $0x1f0] sm:$0xff]  ;;  %v1749_v23 = vld [vmem:[%s2489_s13 + $0x48] sm:$0xf] }
  0x2e   : > { %1169 = vmatmul.bf16.vlgmr.msra.gmra.mxu3 %v1902_v19  ;;  %1139 = vmatmul.bf16.vlgmr.msra.gmra.mxu0 %v1710_v26  ;;  %v2332_v16 = vld [vmem:[%s2988_s1 + $0x170] sm:$0xff]  ;;  %v2347_v19 = vld [vmem:[%s2988_s1 + $0x1e8] sm:$0xff] }
  0x2f   : > { %v1751_v26 = vld [vmem:[%s2489_s13 + $0x68] sm:$0xf0] }
  0x30   : > { %1230 = vmatpush.bf16.msrb.mxu2 %v2308_v22  ;;  %1181 = vmatpush.bf16.msrb.mxu1 %v2300_v24  ;;  %v1743_v22 = vld [vmem:[%s2489_s13 + $0x60] sm:$0xf0]  ;;  %v2235_v24 = vld [vmem:[%s2489_s13 + $0x64] sm:$0xf0] }
  0x31   : > { %1279 = vmatpush.bf16.msrb.mxu3 %v2316_v25  ;;  %1328 = vmatpush.bf16.msrb.mxu0 %v2324_v28  ;;  %v2231_v25 = vld [vmem:[%s2489_s13 + $0x4c] sm:$0xf]  ;;  %v1750_v28 = vor.u32 %v2235_v24, %v1749_v23 }
  0x34   : > { %1231 = vmatpush.bf16.msrb.mxu2 %v2307_v27  ;;  %1182 = vmatpush.bf16.msrb.mxu1 %v2299_v29  ;;  %v1746_v27 = vor.u32 %v2230_v21, %v1743_v22  ;;  %v1754_v29 = vor.u32 %v2231_v25, %v1751_v26  ;;  %v2263_v21 = vld [vmem:[%s2489_s13 + $0x14c] sm:$0xf]  ;;  %v1885_v26 = vld [vmem:[%s2489_s13 + $0x150] sm:$0xf] }
  0x35   : > { %1280 = vmatpush.bf16.msrb.mxu3 %v2315_v30  ;;  %1329 = vmatpush.bf16.msrb.mxu0 %v2323_v32  ;;  %v1757_v30 = vld [vmem:[%s2489_s13 + $0x50] sm:$0xf]  ;;  %v1879_v22 = vld [vmem:[%s2489_s13 + $0x168] sm:$0xf0] }
  0x36   : > { %v1882_v25 = vor.u32 %v2263_v21, %v1879_v22 }
  0x38   : > { %1232 = vmatpush.bf16.msrb.mxu2 %v2306_v31  ;;  %1183 = vmatpush.bf16.msrb.mxu1 %v2298_v33  ;;  %v2236_v31 = vld [vmem:[%s2489_s13 + $0x6c] sm:$0xf0]  ;;  %v2338_v33 = vld [vmem:[%s2988_s1 + $0x1a0] sm:$0xff] }
  0x39   : > { %1281 = vmatpush.bf16.msrb.mxu3 %v2314_v34  ;;  %1330 = vmatpush.bf16.msrb.mxu0 %v2322_v42  ;;  %v1758_v32 = vor.u32 %v2236_v31, %v1757_v30  ;;  %v2346_v34 = vld [vmem:[%s2988_s1 + $0x1e0] sm:$0xff]  ;;  %v1778_v42 = vor.u32 %v2238_v36, %v1775_v37  ;;  %v2271_v36 = vld [vmem:[%s2489_s13 + $0x18c] sm:$0xf] }
  0x3a   : > { %v2342_v30 = vld [vmem:[%s2988_s1 + $0x1c0] sm:$0xff]  ;;  %v1911_v37 = vld [vmem:[%s2489_s13 + $0x1a8] sm:$0xf0] }
  0x3b   : > { %1154 = vmatmul.bf16.gmra.mxu1 %v1806_v45  ;;  %1164 = vmatmul.bf16.gmra.mxu2 %v1870_v46  ;;  %v1789_v45 = vld [vmem:[%s2489_s13 + $0x90] sm:$0xf]  ;;  %v2326_v31 = vld [vmem:[%s2988_s1 + $0x140] sm:$0xff] }
  0x3c   : > { %1233 = vmatpush.bf16.msrb.mxu2 %v2305_v41  ;;  %1184 = vmatpush.bf16.msrb.mxu1 %v2297_v43  ;;  %v1783_v41 = vld [vmem:[%s2489_s13 + $0xa8] sm:$0xf0]  ;;  %v1782_v43 = vor.u32 %v2243_v39, %v1781_v38  ;;  %v2244_v46 = vld [vmem:[%s2489_s13 + $0xac] sm:$0xf0] }
  0x3d   : > { %1282 = vmatpush.bf16.msrb.mxu3 %v2313_v44  ;;  %1331 = vmatpush.bf16.msrb.mxu0 %v2321_v51  ;;  %v1786_v44 = vor.u32 %v2239_v40, %v1783_v41  ;;  %v2246_v51 = vld [vmem:[%s2489_s13 + $0xc4] sm:$0xf]  ;;  %v1914_v41 = vor.u32 %v2271_v36, %v1911_v37  ;;  %v2232_v36 = vld [vmem:[%s2489_s13 + $0x54] sm:$0xf] }
  0x3e   : > { %1174 = vmatmul.bf16.gmra.mxu3 %v1934_v47  ;;  %1144 = vmatmul.bf16.gmra.mxu0 %v1742_v54  ;;  %v1790_v47 = vor.u32 %v2244_v46, %v1789_v45  ;;  %v2251_v54 = vld [vmem:[%s2489_s13 + $0xe4] sm:$0xf0]  ;;  %v2739_v45 = vld [vmem:[%s2989_s2] ss:$0 sm:$0xff] }
  0x3f   : > { %v1551_v37 = vld [vmem:[%s2990_s3 + $0x60] sm:$0xff] }
  0x40   : > { %1234 = vmatpush.bf16.msrb.mxu2 %v2304_v50  ;;  %1185 = vmatpush.bf16.msrb.mxu1 %v2296_v52  ;;  %v2329_v50 = vld [vmem:[%s2988_s1 + $0x158] sm:$0xff]  ;;  %v1807_v52 = vld [vmem:[%s2489_s13 + $0xe0] sm:$0xf0] }
  0x41   : > { %1283 = vmatpush.bf16.msrb.mxu3 %v2312_v53  ;;  %1332 = vmatpush.bf16.msrb.mxu0 %v2320_v56  ;;  %v1813_v53 = vld [vmem:[%s2489_s13 + $0xc8] sm:$0xf]  ;;  %v1815_v56 = vld [vmem:[%s2489_s13 + $0xe8] sm:$0xf0] }
  0x44   : > { %1235 = vmatpush.bf16.msrb.mxu2 %v2303_v55  ;;  %1186 = vmatpush.bf16.msrb.mxu1 %v2295_v57  ;;  %v2247_v55 = vld [vmem:[%s2489_s13 + $0xcc] sm:$0xf]  ;;  %v1810_v57 = vor.u32 %v2246_v51, %v1807_v52  ;;  %v2278_v51 = vld [vmem:[%s2489_s13 + $0x1c4] sm:$0xf] }
  0x45   : > { %1284 = vmatpush.bf16.msrb.mxu3 %v2311_v58  ;;  %1333 = vmatpush.bf16.msrb.mxu0 %v2319_v60  ;;  %v1814_v58 = vor.u32 %v2251_v54, %v1813_v53  ;;  %v1821_v60 = vld [vmem:[%s2489_s13 + $0xd0] sm:$0xf]  ;;  %v1935_v52 = vld [vmem:[%s2489_s13 + $0x1e0] sm:$0xf0]  ;;  %v1941_v53 = vld [vmem:[%s2489_s13 + $0x1c8] sm:$0xf] }
  0x46   : > { %v2283_v54 = vld [vmem:[%s2489_s13 + $0x1e4] sm:$0xf0] }
  0x48   : > { %1236 = vmatpush.bf16.msrb.mxu2 %v2302_v59  ;;  %1187 = vmatpush.bf16.msrb.mxu1 %v2294_v61  ;;  %v1818_v59 = vor.u32 %v2247_v55, %v1815_v56  ;;  %v2252_v61 = vld [vmem:[%s2489_s13 + $0xec] sm:$0xf0]  ;;  %v2279_v55 = vld [vmem:[%s2489_s13 + $0x1cc] sm:$0xf] }
  0x49   : > { %1285 = vmatpush.bf16.msrb.mxu3 %v2310_v62  ;;  %1334 = vmatpush.bf16.msrb.mxu0 %v2318_v8  ;;  %v1822_v62 = vor.u32 %v2252_v61, %v1821_v60  ;;  %v1943_v56 = vld [vmem:[%s2489_s13 + $0x1e8] sm:$0xf0]  ;;  %v1938_v60 = vor.u32 %v2278_v51, %v1935_v52  ;;  %v1942_v61 = vor.u32 %v2283_v54, %v1941_v53 }
  0x4b   : > { %1188 = vmatmul.bf16.vlgmr.msrb.gmra.mxu1 %v1714_v9  ;;  %1237 = vmatmul.bf16.vlgmr.msrb.gmra.mxu2 %v1718_v10  ;;  %v1850_v10 = vor.u32 %v2255_v6, %v1847_v7 }
  0x4c   : > { %1425 = vmatpush.bf16.msra.mxu2 %v2341_v1  ;;  %1376 = vmatpush.bf16.msra.mxu1 %v2333_v5  ;;  %v2328_v1 = vld [vmem:[%s2988_s1 + $0x150] sm:$0xff]  ;;  %v2259_v5 = vld [vmem:[%s2489_s13 + $0x124] sm:$0xf0] }
  0x4d   : > { %1474 = vmatpush.bf16.msra.mxu3 %v2349_v2  ;;  %v2254_v2 = vld [vmem:[%s2489_s13 + $0x104] sm:$0xf]  ;;  %v1846_v9 = vor.u32 %v2259_v5, %v1845_v4  ;;  %v1554_v4 = vld [vmem:[%s2990_s3 + $0x78] sm:$0xff] }
  0x4e   : > { %1286 = vmatmul.bf16.vlgmr.msrb.gmra.mxu3 %v1722_v11  ;;  %1335 = vmatmul.bf16.vlgmr.msrb.gmra.mxu0 %v1726_v17  ;;  %v1842_v8 = vor.u32 %v2254_v2, %v1839_v3  ;;  %v1853_v11 = vld [vmem:[%s2489_s13 + $0x110] sm:$0xf]  ;;  %v2262_v17 = vld [vmem:[%s2489_s13 + $0x144] sm:$0xf] }
  0x4f   : > { %v1854_v13 = vor.u32 %v2260_v12, %v1853_v11  ;;  %v2284_v2 = vld [vmem:[%s2489_s13 + $0x1ec] sm:$0xf0]  ;;  %1559 = vmatpush.msra.mxu0 %v1554_v4  ;;  %v2224_v11 = vld [vmem:[%s2489_s13 + $0x14] sm:$0xf] }
  0x50   : > { %1426 = vmatpush.bf16.msra.mxu2 %v2340_v14  ;;  %1377 = vmatpush.bf16.msra.mxu1 %v2332_v16  ;;  %v2335_v14 = vld [vmem:[%s2988_s1 + $0x188] sm:$0xff]  ;;  %v1553_v12 = vld [vmem:[%s2990_s3 + $0x70] sm:$0xff] }
  0x51   : > { %1475 = vmatpush.bf16.msra.mxu3 %v2348_v15  ;;  %v2343_v15 = vld [vmem:[%s2988_s1 + $0x1c8] sm:$0xff]  ;;  %1560 = vmatpush.msra.mxu0 %v1553_v12  ;;  %v1791_v12 = vld [vmem:[%s2489_s13 + $0xb0] sm:$0xf0] }
  0x52   : > { %v2327_v16 = vld [vmem:[%s2988_s1 + $0x148] sm:$0xff] }
  0x54   : > { %1427 = vmatpush.bf16.msra.mxu2 %v2339_v18  ;;  %1378 = vmatpush.bf16.msra.mxu1 %v2331_v20  ;;  %v1871_v18 = vld [vmem:[%s2489_s13 + $0x160] sm:$0xf0]  ;;  %v2267_v20 = vld [vmem:[%s2489_s13 + $0x164] sm:$0xf0] }
  0x55   : > { %1476 = vmatpush.bf16.msra.mxu3 %v2347_v19  ;;  %v1877_v19 = vld [vmem:[%s2489_s13 + $0x148] sm:$0xf]  ;;  %v1874_v23 = vor.u32 %v2262_v17, %v1871_v18  ;;  %v1735_v17 = vld [vmem:[%s2489_s13 + $0x38] sm:$0xf0] }
  0x56   : > { %v1878_v24 = vor.u32 %v2267_v20, %v1877_v19 }
  0x58   : > { %1428 = vmatpush.bf16.msra.mxu2 %v2338_v33  ;;  %1379 = vmatpush.bf16.msra.mxu1 %v2330_v35  ;;  %v1903_v33 = vld [vmem:[%s2489_s13 + $0x1a0] sm:$0xf0]  ;;  %v2275_v35 = vld [vmem:[%s2489_s13 + $0x1a4] sm:$0xf0] }
  0x59   : > { %1477 = vmatpush.bf16.msra.mxu3 %v2346_v34  ;;  %v1909_v34 = vld [vmem:[%s2489_s13 + $0x188] sm:$0xf] }
  0x5a   : > { %v1910_v39 = vor.u32 %v2275_v35, %v1909_v34 }
  0x5b   : > { %1193 = vmatmul.bf16.gmra.mxu1 %v1746_v27  ;;  %1242 = vmatmul.bf16.gmra.mxu2 %v1750_v28  ;;  %v2268_v27 = vld [vmem:[%s2489_s13 + $0x16c] sm:$0xf0] }
  0x5c   : > { %1429 = vmatpush.bf16.msra.mxu2 %v2337_v48  ;;  %1380 = vmatpush.bf16.msra.mxu1 %v2329_v50  ;;  %v1886_v28 = vor.u32 %v2268_v27, %v1885_v26 }
  0x5d   : > { %1478 = vmatpush.bf16.msra.mxu3 %v2345_v49 }
  0x5e   : > { %1291 = vmatmul.bf16.gmra.mxu3 %v1754_v29  ;;  %1340 = vmatmul.bf16.gmra.mxu0 %v1758_v32  ;;  %v2334_v29 = vld [vmem:[%s2988_s1 + $0x180] sm:$0xff] }
  0x5f   : > { %v2270_v32 = vld [vmem:[%s2489_s13 + $0x184] sm:$0xf] }
  0x60   : > { %1430 = vmatpush.bf16.msra.mxu2 %v2336_v63  ;;  %1381 = vmatpush.bf16.msra.mxu1 %v2328_v1  ;;  %v1906_v38 = vor.u32 %v2270_v32, %v1903_v33  ;;  %v1949_v1 = vld [vmem:[%s2489_s13 + $0x1d0] sm:$0xf] }
  0x61   : > { %1479 = vmatpush.bf16.msra.mxu3 %v2344_v0  ;;  %v1946_v0 = vor.u32 %v2279_v55, %v1943_v56  ;;  %v1950_v3 = vor.u32 %v2284_v2, %v1949_v1 }
  0x64   : > { %1431 = vmatpush.bf16.msra.mxu2 %v2335_v14  ;;  %1382 = vmatpush.bf16.msra.mxu1 %v2327_v16  ;;  %v1733_v14 = vld [vmem:[%s2489_s13 + $0x18] sm:$0xf]  ;;  %v2225_v16 = vld [vmem:[%s2489_s13 + $0x1c] sm:$0xf] }
  0x65   : > { %1480 = vmatpush.bf16.msra.mxu3 %v2343_v15  ;;  %v2229_v15 = vld [vmem:[%s2489_s13 + $0x34] sm:$0xf0]  ;;  %v1738_v26 = vor.u32 %v2225_v16, %v1735_v17  ;;  %v2241_v16 = vld [vmem:[%s2489_s13 + $0x9c] sm:$0xf] }
  0x66   : > { %v1799_v17 = vld [vmem:[%s2489_s13 + $0xb8] sm:$0xf0] }
  0x68   : > { %1432 = vmatpush.bf16.msra.mxu2 %v2334_v29  ;;  %1383 = vmatpush.bf16.msra.mxu1 %v2326_v31 }
  0x69   : > { %1481 = vmatpush.bf16.msra.mxu3 %v2342_v30 }
  0x6b   : > { %1198 = vmatmul.bf16.gmra.mxu1 %v1778_v42  ;;  %1247 = vmatmul.bf16.gmra.mxu2 %v1782_v43  ;;  %v1917_v42 = vld [vmem:[%s2489_s13 + $0x190] sm:$0xf] }
  0x6c   : > { %v2276_v43 = vld [vmem:[%s2489_s13 + $0x1ac] sm:$0xf0] }
  0x6e   : > { %1296 = vmatmul.bf16.gmra.mxu3 %v1786_v44  ;;  %1345 = vmatmul.bf16.gmra.mxu0 %v1790_v47  ;;  %v1918_v44 = vor.u32 %v2276_v43, %v1917_v42  ;;  %v2233_v43 = vld [vmem:[%s2489_s13 + $0x5c] sm:$0xf] }
  0x7b   : > { %1203 = vmatmul.bf16.gmra.mxu1 %v1810_v57  ;;  %1252 = vmatmul.bf16.gmra.mxu2 %v1814_v58 }
  0x7e   : > { %1301 = vmatmul.bf16.gmra.mxu3 %v1818_v59  ;;  %1350 = vmatmul.bf16.gmra.mxu0 %v1822_v62 }
  0x8b   : > { %1208 = vmatmul.bf16.gmra.mxu1 %v1842_v8  ;;  %1257 = vmatmul.bf16.gmra.mxu2 %v1846_v9 }
  0x8e   : > { %1306 = vmatmul.bf16.gmra.mxu3 %v1850_v10  ;;  %1355 = vmatmul.bf16.gmra.mxu0 %v1854_v13  ;;  %v1727_v13 = vld [vmem:[%s2489_s13 + $0x30] sm:$0xf0] }
  0x8f   : > { %v1730_v22 = vor.u32 %v2224_v11, %v1727_v13  ;;  %v1549_v11 = vld [vmem:[%s2990_s3 + $0x50] sm:$0xff]  ;;  %v1797_v13 = vld [vmem:[%s2489_s13 + $0x98] sm:$0xf] }
  0x9b   : > { %1213 = vmatmul.bf16.gmra.mxu1 %v1874_v23  ;;  %1262 = vmatmul.bf16.gmra.mxu2 %v1878_v24  ;;  %v1734_v23 = vor.u32 %v2229_v15, %v1733_v14  ;;  %v2245_v14 = vld [vmem:[%s2489_s13 + $0xb4] sm:$0xf0] }
  0x9e   : > { %1311 = vmatmul.bf16.gmra.mxu3 %v1882_v25  ;;  %1360 = vmatmul.bf16.gmra.mxu0 %v1886_v28  ;;  %v1552_v28 = vld [vmem:[%s2990_s3 + $0x68] sm:$0xff] }
  0x9f   : > { %1561 = vmatpush.msra.mxu0 %v1552_v28 }
  0xa1   : > { %1562 = vmatpush.msra.mxu0 %v1551_v37 }
  0xa8   : > { %v2732_v40 = vpop.f32.mrf.mxu1 }
  0xab   : > { %1218 = vmatmul.bf16.gmra.mxu1 %v1906_v38  ;;  %1267 = vmatmul.bf16.gmra.mxu2 %v1910_v39  ;;  %v1140_v10 = vpop.f32.mrf.mxu0  ;;  %v1759_v38 = vld [vmem:[%s2489_s13 + $0x70] sm:$0xf0]  ;;  %v1765_v39 = vld [vmem:[%s2489_s13 + $0x58] sm:$0xf] }
  0xac   : > { %v1141_v19 = vadd.f32 %v2739_v45, %v1140_v10  ;;  %v1762_v54 = vor.u32 %v2232_v36, %v1759_v38  ;;  %v2240_v10 = vld [vmem:[%s2489_s13 + $0x94] sm:$0xf] }
  0xad   : > { %v2248_v38 = vld [vmem:[%s2489_s13 + $0xd4] sm:$0xf] }
  0xae   : > { %1316 = vmatmul.bf16.gmra.mxu3 %v1914_v41  ;;  %v1160_v46 = vpop.f32.mrf.mxu2  ;;  %1365 = vmatmul.bf16.gmra.mxu0 %v1918_v44  ;;  %v2237_v41 = vld [vmem:[%s2489_s13 + $0x74] sm:$0xf0]  ;;  %v1767_v44 = vld [vmem:[%s2489_s13 + $0x78] sm:$0xf0] }
  0xaf   : > { %v2742_v47 = vadd.f32 %v2739_v45, %v1160_v46  ;;  %v1766_v55 = vor.u32 %v2237_v41, %v1765_v39  ;;  %v1547_v39 = vld [vmem:[%s2990_s3 + $0x40] sm:$0xff]  ;;  %v1823_v41 = vld [vmem:[%s2489_s13 + $0xf0] sm:$0xf0] }
  0xb0   : > { %v2747_v50 = vpop.f32.mrf.mxu1 }
  0xb1   : > { %v1170_v48 = vpop.f32.mrf.mxu3 }
  0xb2   : > { %v2745_v49 = vadd.f32 %v2739_v45, %v1170_v48 }
  0xb3   : > { %v1142_v29 = vpop.f32.mrf.mxu0 }
  0xb4   : > { %v1143_v34 = vadd.f32 %v2739_v45, %v1142_v29 }
  0xb6   : > { %v1162_v57 = vpop.f32.mrf.mxu2 }
  0xb7   : > { %v2756_v58 = vadd.f32 %v2739_v45, %v1162_v57  ;;  %v1770_v57 = vor.u32 %v2233_v43, %v1767_v44  ;;  %v2253_v43 = vld [vmem:[%s2489_s13 + $0xf4] sm:$0xf0]  ;;  %v2249_v44 = vld [vmem:[%s2489_s13 + $0xdc] sm:$0xf] }
  0xb8   : > { %v2761_v63 = vpop.f32.mrf.mxu1 }
  0xb9   : > { %v1172_v59 = vpop.f32.mrf.mxu3 }
  0xba   : > { %v2759_v62 = vadd.f32 %v2739_v45, %v1172_v59 }
  0xbb   : > { %1223 = vmatmul.bf16.gmra.mxu1 %v1938_v60  ;;  %1272 = vmatmul.bf16.gmra.mxu2 %v1942_v61  ;;  %v1145_v46 = vpop.f32.mrf.mxu0  ;;  %v1550_v61 = vld [vmem:[%s2990_s3 + $0x58] sm:$0xff] }
  0xbc   : > { %v1146_v51 = vadd.f32 %v2739_v45, %v1145_v46  ;;  %1563 = vmatpush.msra.mxu0 %v1550_v61  ;;  %v1831_v46 = vld [vmem:[%s2489_s13 + $0xf8] sm:$0xf0] }
  0xbd   : > { %v1546_v61 = vld [vmem:[%s2990_s3 + $0x38] sm:$0xff] }
  0xbe   : > { %1321 = vmatmul.bf16.gmra.mxu3 %v1946_v0  ;;  %v1165_v5 = vpop.f32.mrf.mxu2  ;;  %1370 = vmatmul.bf16.gmra.mxu0 %v1950_v3 }
  0xbf   : > { %v2769_v6 = vadd.f32 %v2739_v45, %v1165_v5  ;;  %1564 = vmatpush.msra.mxu0 %v1549_v11  ;;  %v1545_v11 = vld [vmem:[%s2990_s3 + $0x30] sm:$0xff] }
  0xc0   : > { %v2774_v9 = vpop.f32.mrf.mxu1 }
  0xc1   : > { %v1175_v7 = vpop.f32.mrf.mxu3 }
  0xc2   : > { %v2772_v8 = vadd.f32 %v2739_v45, %v1175_v7 }
  0xc3   : > { %v1147_v3 = vpop.f32.mrf.mxu0 }
  0xc4   : > { %v1148_v5 = vadd.f32 %v2739_v45, %v1147_v3 }
  0xc6   : > { %v1167_v18 = vpop.f32.mrf.mxu2 }
  0xc7   : > { %v2787_v20 = vadd.f32 %v2739_v45, %v1167_v18 }
  0xc8   : > { %v1189_v25 = vpop.f32.mrf.mxu1 }
  0xc9   : > { %v1177_v21 = vpop.f32.mrf.mxu3  ;;  %v1190_v27 = vadd.f32 %v1189_v25, %v1141_v19  ;;  %v1151_v19 = vadd.f32 %v2739_v45, %v2732_v40  ;;  %v1798_v25 = vor.u32 %v2245_v14, %v1797_v13  ;;  %v1861_v13 = vld [vmem:[%s2489_s13 + $0x118] sm:$0xf] }
  0xca   : > { %v2790_v24 = vadd.f32 %v2739_v45, %v1177_v21  ;;  %v2261_v14 = vld [vmem:[%s2489_s13 + $0x134] sm:$0xf0] }
  0xcb   : > { %1384 = vmatmul.bf16.vlgmr.msra.gmra.mxu1 %v1730_v22  ;;  %1433 = vmatmul.bf16.vlgmr.msra.gmra.mxu2 %v1734_v23  ;;  %v1794_v23 = vor.u32 %v2240_v10, %v1791_v12  ;;  %v2256_v10 = vld [vmem:[%s2489_s13 + $0x114] sm:$0xf] }
  0xcc   : > { %v1855_v12 = vld [vmem:[%s2489_s13 + $0x130] sm:$0xf0] }
  0xce   : > { %1482 = vmatmul.bf16.vlgmr.msra.gmra.mxu3 %v1738_v26  ;;  %v1238_v30 = vpop.f32.mrf.mxu2 }
  0xcf   : > { %v1239_v31 = vadd.f32 %v1238_v30, %v1190_v27  ;;  %v1802_v27 = vor.u32 %v2241_v16, %v1799_v17  ;;  %v1548_v30 = vld [vmem:[%s2990_s3 + $0x48] sm:$0xff]  ;;  %v1863_v16 = vld [vmem:[%s2489_s13 + $0x138] sm:$0xf0] }
  0xd0   : > { %v1191_v33 = vpop.f32.mrf.mxu1  ;;  %1565 = vmatpush.msra.mxu0 %v1548_v30 }
  0xd1   : > { %v1287_v32 = vpop.f32.mrf.mxu3  ;;  %v1192_v42 = vadd.f32 %v1191_v33, %v1143_v34 }
  0xd2   : > { %v2796_v35 = vadd.f32 %v1287_v32, %v1239_v31  ;;  %v1153_v31 = vadd.f32 %v2739_v45, %v2747_v50  ;;  %1566 = vmatpush.msra.mxu0 %v1547_v39  ;;  %v1156_v50 = vadd.f32 %v2739_v45, %v2761_v63  ;;  %v2265_v39 = vld [vmem:[%s2489_s13 + $0x15c] sm:$0xf] }
  0xd4   : > { %1567 = vmatpush.msra.mxu0 %v1546_v61 }
  0xd6   : > { %v1240_v48 = vpop.f32.mrf.mxu2  ;;  %1568 = vmatpush.msra.mxu0 %v1545_v11 }
  0xd7   : > { %v1241_v52 = vadd.f32 %v1240_v48, %v1192_v42  ;;  %v1829_v42 = vld [vmem:[%s2489_s13 + $0xd8] sm:$0xf] }
  0xd8   : > { %v1194_v56 = vpop.f32.mrf.mxu1 }
  0xd9   : > { %v1289_v53 = vpop.f32.mrf.mxu3  ;;  %v1195_v60 = vadd.f32 %v1194_v56, %v1146_v51  ;;  %v1834_v56 = vor.u32 %v2249_v44, %v1831_v46 }
  0xda   : > { %v2808_v59 = vadd.f32 %v1289_v53, %v1241_v52  ;;  %v1826_v53 = vor.u32 %v2248_v38, %v1823_v41  ;;  %v2269_v38 = vld [vmem:[%s2489_s13 + $0x174] sm:$0xf0]  ;;  %v1895_v41 = vld [vmem:[%s2489_s13 + $0x178] sm:$0xf0] }
  0xdb   : > { %1389 = vmatmul.bf16.gmra.mxu1 %v1762_v54  ;;  %1438 = vmatmul.bf16.gmra.mxu2 %v1766_v55  ;;  %v1830_v54 = vor.u32 %v2253_v43, %v1829_v42 }
  0xde   : > { %1487 = vmatmul.bf16.gmra.mxu3 %v1770_v57  ;;  %v1243_v0 = vpop.f32.mrf.mxu2 }
  0xdf   : > { %v1244_v1 = vadd.f32 %v1243_v0, %v1195_v60  ;;  %v1158_v0 = vadd.f32 %v2739_v45, %v2774_v9  ;;  %v1858_v9 = vor.u32 %v2256_v10, %v1855_v12  ;;  %v1927_v10 = vld [vmem:[%s2489_s13 + $0x1b8] sm:$0xf0] }
  0xe0   : > { %v1196_v4 = vpop.f32.mrf.mxu1 }
  0xe1   : > { %v1292_v2 = vpop.f32.mrf.mxu3  ;;  %v1197_v15 = vadd.f32 %v1196_v4, %v1148_v5 }
  0xe2   : > { %v2814_v7 = vadd.f32 %v1292_v2, %v1244_v1 }
  0xe6   : > { %v1245_v18 = vpop.f32.mrf.mxu2 }
  0xe7   : > { %v1246_v21 = vadd.f32 %v1245_v18, %v1197_v15  ;;  %v2257_v15 = vld [vmem:[%s2489_s13 + $0x11c] sm:$0xf] }
  0xe8   : > { %v1199_v26 = vpop.f32.mrf.mxu1 }
  0xe9   : > { %v1294_v22 = vpop.f32.mrf.mxu3  ;;  %v1200_v29 = vadd.f32 %v1199_v26, %v1151_v19  ;;  %v1862_v19 = vor.u32 %v2261_v14, %v1861_v13  ;;  %v1544_v26 = vld [vmem:[%s2990_s3 + $0x28] sm:$0xff] }
  0xea   : > { %v2827_v28 = vadd.f32 %v1294_v22, %v1246_v21  ;;  %v1866_v22 = vor.u32 %v2257_v15, %v1863_v16  ;;  %1569 = vmatpush.msra.mxu0 %v1544_v26 }
  0xeb   : > { %1394 = vmatmul.bf16.gmra.mxu1 %v1794_v23  ;;  %1443 = vmatmul.bf16.gmra.mxu2 %v1798_v25 }
  0xee   : > { %1492 = vmatmul.bf16.gmra.mxu3 %v1802_v27  ;;  %v1248_v40 = vpop.f32.mrf.mxu2 }
  0xef   : > { %v1249_v32 = vadd.f32 %v1248_v40, %v1200_v29 }
  0xf0   : > { %v1201_v34 = vpop.f32.mrf.mxu1 }
  0xf1   : > { %v1297_v33 = vpop.f32.mrf.mxu3  ;;  %v1202_v37 = vadd.f32 %v1201_v34, %v1153_v31  ;;  %v1887_v34 = vld [vmem:[%s2489_s13 + $0x170] sm:$0xf0] }
  0xf2   : > { %v2834_v36 = vadd.f32 %v1297_v33, %v1249_v32  ;;  %v1543_v33 = vld [vmem:[%s2990_s3 + $0x20] sm:$0xff] }
  0xf3   : > { %1570 = vmatpush.msra.mxu0 %v1543_v33  ;;  %v2281_v33 = vld [vmem:[%s2489_s13 + $0x1dc] sm:$0xf] }
  0xf6   : > { %v1250_v48 = vpop.f32.mrf.mxu2 }
  0xf7   : > { %v1251_v51 = vadd.f32 %v1250_v48, %v1202_v37  ;;  %v1893_v37 = vld [vmem:[%s2489_s13 + $0x158] sm:$0xf] }
  0xf8   : > { %v1204_v55 = vpop.f32.mrf.mxu1  ;;  %v1894_v48 = vor.u32 %v2269_v38, %v1893_v37 }
  0xf9   : > { %v1299_v52 = vpop.f32.mrf.mxu3  ;;  %v1205_v60 = vadd.f32 %v1204_v55, %v1156_v50 }
  0xfa   : > { %v2847_v57 = vadd.f32 %v1299_v52, %v1251_v51  ;;  %v1898_v51 = vor.u32 %v2265_v39, %v1895_v41 }
  0xfb   : > { %1399 = vmatmul.bf16.gmra.mxu1 %v1826_v53  ;;  %1448 = vmatmul.bf16.gmra.mxu2 %v1830_v54  ;;  %v1542_v53 = vld [vmem:[%s2990_s3 + $0x18] sm:$0xff] }
  0xfc   : > { %1571 = vmatpush.msra.mxu0 %v1542_v53 }
  0xfe   : > { %1497 = vmatmul.bf16.gmra.mxu3 %v1834_v56  ;;  %v1253_v63 = vpop.f32.mrf.mxu2 }
  0xff   : > { %v1254_v1 = vadd.f32 %v1253_v63, %v1205_v60 }
 0x100   : > { %v1206_v3 = vpop.f32.mrf.mxu1 }
 0x101   : > { %v1302_v2 = vpop.f32.mrf.mxu3  ;;  %v1207_v5 = vadd.f32 %v1206_v3, %v1158_v0  ;;  %v1541_v0 = vld [vmem:[%s2990_s3 + $0x10] sm:$0xff]  ;;  %v2277_v3 = vld [vmem:[%s2489_s13 + $0x1b4] sm:$0xf0] }
 0x102   : > { %v2854_v4 = vadd.f32 %v1302_v2, %v1254_v1  ;;  %v1919_v1 = vld [vmem:[%s2489_s13 + $0x1b0] sm:$0xf0]  ;;  %v1925_v2 = vld [vmem:[%s2489_s13 + $0x198] sm:$0xf]  ;;  %1572 = vmatpush.msra.mxu0 %v1541_v0 }
 0x103   : > { %v1926_v15 = vor.u32 %v2277_v3, %v1925_v2 }
 0x106   : > { %v1255_v17 = vpop.f32.mrf.mxu2 }
 0x107   : > { %v1256_v18 = vadd.f32 %v1255_v17, %v1207_v5  ;;  %v2273_v5 = vld [vmem:[%s2489_s13 + $0x19c] sm:$0xf] }
 0x108   : > { %v1209_v21 = vpop.f32.mrf.mxu1  ;;  %v1930_v17 = vor.u32 %v2273_v5, %v1927_v10 }
 0x109   : > { %v1304_v45 = vpop.f32.mrf.mxu3  ;;  %v1210_v25 = vadd.f32 %v1209_v21, %v2742_v47  ;;  %v2264_v47 = vld [vmem:[%s2489_s13 + $0x154] sm:$0xf] }
 0x10a   : > { %v2865_v23 = vadd.f32 %v1304_v45, %v1256_v18  ;;  %v1890_v46 = vor.u32 %v2264_v47, %v1887_v34  ;;  %v1336_v45 = vpop.f32.mrf.mxu0  ;;  %v2285_v47 = vld [vmem:[%s2489_s13 + $0x1f4] sm:$0xf0]  ;;  %v1959_v34 = vld [vmem:[%s2489_s13 + $0x1f8] sm:$0xf0] }
 0x10b   : > { %1404 = vmatmul.bf16.gmra.mxu1 %v1858_v9  ;;  %1453 = vmatmul.bf16.gmra.mxu2 %v1862_v19  ;;  %v1540_v9 = vld [vmem:[%s2990_s3 + $0x8] sm:$0xff] }
 0x10c   : > { %1573 = vmatpush.msra.mxu0 %v1540_v9 }
 0x10e   : > { %1502 = vmatmul.bf16.gmra.mxu3 %v1866_v22  ;;  %v1258_v27 = vpop.f32.mrf.mxu2 }
 0x10f   : > { %v1259_v29 = vadd.f32 %v1258_v27, %v1210_v25  ;;  %v2280_v27 = vld [vmem:[%s2489_s13 + $0x1d4] sm:$0xf] }
 0x110   : > { %v1211_v40 = vpop.f32.mrf.mxu1 }
 0x111   : > { %v1307_v30 = vpop.f32.mrf.mxu3  ;;  %v1212_v32 = vadd.f32 %v1211_v40, %v2756_v58  ;;  %v1951_v40 = vld [vmem:[%s2489_s13 + $0x1f0] sm:$0xf0] }
 0x112   : > { %v2871_v31 = vadd.f32 %v1307_v30, %v1259_v29  ;;  %v1539_v29 = vld [vmem:[%s2990_s3] sm:$0xff]  ;;  %v1338_v30 = vpop.f32.mrf.mxu0  ;;  %v1954_v41 = vor.u32 %v2280_v27, %v1951_v40 }
 0x113   : > { %1574 = vmatpush.msra.mxu0 %v1539_v29 }
 0x116   : > { %v1260_v42 = vpop.f32.mrf.mxu2 }
 0x117   : > { %v1261_v43 = vadd.f32 %v1260_v42, %v1212_v32  ;;  %v1957_v32 = vld [vmem:[%s2489_s13 + $0x1d8] sm:$0xf] }
 0x118   : > { %v1214_v50 = vpop.f32.mrf.mxu1  ;;  %v1958_v42 = vor.u32 %v2285_v47, %v1957_v32 }
 0x119   : > { %v1309_v44 = vpop.f32.mrf.mxu3  ;;  %v1215_v52 = vadd.f32 %v1214_v50, %v2769_v6  ;;  %v2272_v6 = vld [vmem:[%s2489_s13 + $0x194] sm:$0xf]  ;;  %s1706_s13 = sshll.u32 %s2994_s26, 3 }
 0x11a   : > { %v2883_v58 = vadd.f32 %v1309_v44, %v1261_v43  ;;  %v1922_v14 = vor.u32 %v2272_v6, %v1919_v1  ;;  %v1962_v44 = vor.u32 %v2281_v33, %v1959_v34  ;;  %s2950_s11 = scalar_lea.vmem %s2992_s5, %s1706_s13 }
 0x11b   : > { %1409 = vmatmul.bf16.gmra.mxu1 %v1890_v46  ;;  %1458 = vmatmul.bf16.gmra.mxu2 %v1894_v48  ;;  %v1341_v48 = vpop.f32.mrf.mxu0 }
 0x11e   : > { %1507 = vmatmul.bf16.gmra.mxu3 %v1898_v51  ;;  %v1263_v54 = vpop.f32.mrf.mxu2 }
 0x11f   : > { %v1264_v55 = vadd.f32 %v1263_v54, %v1215_v52 }
 0x120   : > { %v1216_v60 = vpop.f32.mrf.mxu1 }
 0x121   : > { %v1312_v56 = vpop.f32.mrf.mxu3  ;;  %v1217_v63 = vadd.f32 %v1216_v60, %v2787_v20 }
 0x122   : > { %v2889_v61 = vadd.f32 %v1312_v56, %v1264_v55 }
 0x123   : > { %v1343_v6 = vpop.f32.mrf.mxu0 }
 0x126   : > { %v1265_v11 = vpop.f32.mrf.mxu2 }
 0x127   : > { %v1266_v12 = vadd.f32 %v1265_v11, %v1217_v63 }
 0x128   : > { %v1219_v16 = vpop.f32.mrf.mxu1 }
 0x129   : > { %v1314_v13 = vpop.f32.mrf.mxu3  ;;  %v1220_v18 = vadd.f32 %v1219_v16, %v2745_v49 }
 0x12a   : > { %v2901_v20 = vadd.f32 %v1314_v13, %v1266_v12 }
 0x12b   : > { %1414 = vmatmul.bf16.gmra.mxu1 %v1922_v14  ;;  %1463 = vmatmul.bf16.gmra.mxu2 %v1926_v15  ;;  %v1346_v13 = vpop.f32.mrf.mxu0  ;;  %v1339_v14 = vadd.f32 %v1338_v30, %v2808_v59  ;;  %v1344_v30 = vadd.f32 %v1343_v6, %v2827_v28 }
 0x12e   : > { %1512 = vmatmul.bf16.gmra.mxu3 %v1930_v17  ;;  %v1268_v19 = vpop.f32.mrf.mxu2 }
 0x12f   : > { %v1269_v21 = vadd.f32 %v1268_v19, %v1220_v18 }
 0x130   : > { %v1221_v25 = vpop.f32.mrf.mxu1 }
 0x131   : > { %v1317_v22 = vpop.f32.mrf.mxu3  ;;  %v1222_v49 = vadd.f32 %v1221_v25, %v2759_v62 }
 0x132   : > { %v2907_v26 = vadd.f32 %v1317_v22, %v1269_v21 }
 0x136   : > { %v1270_v37 = vpop.f32.mrf.mxu2 }
 0x137   : > { %v1271_v38 = vadd.f32 %v1270_v37, %v1222_v49 }
 0x138   : > { %v1224_v43 = vpop.f32.mrf.mxu1 }
 0x139   : > { %v1319_v39 = vpop.f32.mrf.mxu3  ;;  %v1225_v46 = vadd.f32 %v1224_v43, %v2772_v8  ;;  %v1337_v8 = vadd.f32 %v1336_v45, %v2796_v35  ;;  %v1342_v35 = vadd.f32 %v1341_v48, %v2814_v7  ;;  %v1348_v45 = vpop.f32.mrf.mxu0 }
 0x13a   : > { %v2919_v62 = vadd.f32 %v1319_v39, %v1271_v38  ;;  %v1347_v39 = vadd.f32 %v1346_v13, %v2834_v36 }
 0x13b   : > { %1419 = vmatmul.bf16.gmra.mxu1 %v1954_v41  ;;  %1468 = vmatmul.bf16.gmra.mxu2 %v1958_v42 }
 0x13e   : > { %1517 = vmatmul.bf16.gmra.mxu3 %v1962_v44  ;;  %v1273_v50 = vpop.f32.mrf.mxu2 }
 0x13f   : > { %v1274_v51 = vadd.f32 %v1273_v50, %v1225_v46 }
 0x140   : > { %v1226_v53 = vpop.f32.mrf.mxu1 }
 0x141   : > { %v1322_v52 = vpop.f32.mrf.mxu3  ;;  %v1227_v55 = vadd.f32 %v1226_v53, %v2790_v24  ;;  %v1351_v32 = vpop.f32.mrf.mxu0 }
 0x142   : > { %v2922_v54 = vadd.f32 %v1322_v52, %v1274_v51  ;;  %v1349_v51 = vadd.f32 %v1348_v45, %v2847_v57 }
 0x146   : > { %v1275_v56 = vpop.f32.mrf.mxu2 }
 0x147   : > { %v1276_v60 = vadd.f32 %v1275_v56, %v1227_v55 }
 0x148   : > { %v1385_v0 = vpop.f32.mrf.mxu1 }
 0x149   : > { %v1324_v63 = vpop.f32.mrf.mxu3  ;;  %v1386_v2 = vadd.f32 %v1385_v0, %v1337_v8  ;;  %v1353_v46 = vpop.f32.mrf.mxu0  ;;  %v1352_v0 = vadd.f32 %v1351_v32, %v2854_v4 }
 0x14a   : > { %v2925_v1 = vadd.f32 %v1324_v63, %v1276_v60 }
 0x14e   : > { %v1434_v3 = vpop.f32.mrf.mxu2 }
 0x14f   : > { %v1435_v5 = vadd.f32 %v1434_v3, %v1386_v2 }
 0x150   : > { %v1387_v11 = vpop.f32.mrf.mxu1 }
 0x151   : > { %v1483_v10 = vpop.f32.mrf.mxu3  ;;  %v1388_v24 = vadd.f32 %v1387_v11, %v1339_v14  ;;  %v1356_v6 = vpop.f32.mrf.mxu0 }
 0x152   : > { %v1484_v12 = vadd.f32 %v1483_v10, %v1435_v5 }
 0x154   : > { %2384 = vtanh.f32 %v1484_v12  ;;  %v1354_v12 = vadd.f32 %v1353_v46, %v2865_v23 }
 0x156   : > { %v1436_v15 = vpop.f32.mrf.mxu2 }
 0x157   : > { %v1437_v16 = vadd.f32 %v1436_v15, %v1388_v24 }
 0x158   : > { %v1390_v18 = vpop.f32.mrf.mxu1 }
 0x159   : > { %v1485_v17 = vpop.f32.mrf.mxu3  ;;  %v1391_v21 = vadd.f32 %v1390_v18, %v1342_v35  ;;  %v1358_v13 = vpop.f32.mrf.mxu0 }
 0x15a   : > { %v2385_v9 = vpop.eup %2384  ;;  %v1486_v19 = vadd.f32 %v1485_v17, %v1437_v16 }
 0x15b   : > { %1575 = vmatmul.f32.vlgmr.msra.gmra.mxu0 %v2385_v9  ;;  %v1357_v9 = vadd.f32 %v1356_v6, %v2871_v31 }
 0x15c   : > { %2386 = vtanh.f32 %v1486_v19 }
 0x15e   : > { %v1439_v22 = vpop.f32.mrf.mxu2 }
 0x15f   : > { %v1440_v25 = vadd.f32 %v1439_v22, %v1391_v21 }
 0x160   : > { %v1392_v27 = vpop.f32.mrf.mxu1 }
 0x161   : > { %v1488_v49 = vpop.f32.mrf.mxu3  ;;  %v1393_v40 = vadd.f32 %v1392_v27, %v1344_v30  ;;  %v1361_v35 = vpop.f32.mrf.mxu0  ;;  %v1359_v27 = vadd.f32 %v1358_v13, %v2883_v58 }
 0x162   : > { %v2387_v29 = vpop.eup %2386  ;;  %v1489_v59 = vadd.f32 %v1488_v49, %v1440_v25 }
 0x163   : > { %1578 = vmatmul.f32.gmra.mxu0 %v2387_v29 }
 0x164   : > { %2388 = vtanh.f32 %v1489_v59 }
 0x166   : > { %v1441_v47 = vpop.f32.mrf.mxu2 }
 0x167   : > { %v1442_v33 = vadd.f32 %v1441_v47, %v1393_v40 }
 0x168   : > { %v1395_v37 = vpop.f32.mrf.mxu1 }
 0x169   : > { %v1490_v34 = vpop.f32.mrf.mxu3  ;;  %v1396_v41 = vadd.f32 %v1395_v37, %v1347_v39  ;;  %v1363_v32 = vpop.f32.mrf.mxu0 }
 0x16a   : > { %v2389_v7 = vpop.eup %2388  ;;  %v1491_v38 = vadd.f32 %v1490_v34, %v1442_v33  ;;  %v1362_v34 = vadd.f32 %v1361_v35, %v2889_v61 }
 0x16b   : > { %1581 = vmatmul.f32.gmra.mxu0 %v2389_v7 }
 0x16c   : > { %2390 = vtanh.f32 %v1491_v38 }
 0x16e   : > { %v1444_v42 = vpop.f32.mrf.mxu2 }
 0x16f   : > { %v1445_v43 = vadd.f32 %v1444_v42, %v1396_v41 }
 0x170   : > { %v1397_v48 = vpop.f32.mrf.mxu1 }
 0x171   : > { %v1493_v44 = vpop.f32.mrf.mxu3  ;;  %v1398_v52 = vadd.f32 %v1397_v48, %v1349_v51 }
 0x172   : > { %v2391_v28 = vpop.eup %2390  ;;  %v1494_v50 = vadd.f32 %v1493_v44, %v1445_v43  ;;  %v1366_v43 = vpop.f32.mrf.mxu0  ;;  %v1364_v44 = vadd.f32 %v1363_v32, %v2901_v20 }
 0x173   : > { %1584 = vmatmul.f32.gmra.mxu0 %v2391_v28 }
 0x174   : > { %2392 = vtanh.f32 %v1494_v50 }
 0x176   : > { %v1446_v53 = vpop.f32.mrf.mxu2 }
 0x177   : > { %v1447_v55 = vadd.f32 %v1446_v53, %v1398_v52  ;;  %v1367_v53 = vadd.f32 %v1366_v43, %v2907_v26 }
 0x178   : > { %v1400_v60 = vpop.f32.mrf.mxu1 }
 0x179   : > { %v1495_v56 = vpop.f32.mrf.mxu3  ;;  %v1401_v8 = vadd.f32 %v1400_v60, %v1352_v0 }
 0x17a   : > { %v2393_v63 = vpop.eup %2392  ;;  %v1496_v36 = vadd.f32 %v1495_v56, %v1447_v55  ;;  %v1368_v55 = vpop.f32.mrf.mxu0 }
 0x17b   : > { %1587 = vmatmul.f32.gmra.mxu0 %v2393_v63 }
 0x17c   : > { %2394 = vtanh.f32 %v1496_v36 }
 0x17e   : > { %v1449_v2 = vpop.f32.mrf.mxu2 }
 0x17f   : > { %v1450_v3 = vadd.f32 %v1449_v2, %v1401_v8  ;;  %v1369_v8 = vadd.f32 %v1368_v55, %v2919_v62 }
 0x180   : > { %v1402_v10 = vpop.f32.mrf.mxu1 }
 0x181   : > { %v1498_v5 = vpop.f32.mrf.mxu3  ;;  %v1403_v14 = vadd.f32 %v1402_v10, %v1354_v12 }
 0x182   : > { %v2395_v11 = vpop.eup %2394  ;;  %v1499_v57 = vadd.f32 %v1498_v5, %v1450_v3  ;;  %v1371_v3 = vpop.f32.mrf.mxu0 }
 0x183   : > { %1590 = vmatmul.f32.gmra.mxu0 %v2395_v11  ;;  %v1372_v13 = vadd.f32 %v1371_v3, %v2922_v54 }
 0x184   : > { %2396 = vtanh.f32 %v1499_v57 }
 0x186   : > { %v1451_v24 = vpop.f32.mrf.mxu2 }
 0x187   : > { %v1452_v15 = vadd.f32 %v1451_v24, %v1403_v14 }
 0x188   : > { %v1405_v17 = vpop.f32.mrf.mxu1 }
 0x189   : > { %v1500_v16 = vpop.f32.mrf.mxu3  ;;  %v1406_v19 = vadd.f32 %v1405_v17, %v1357_v9 }
 0x18a   : > { %v2397_v18 = vpop.eup %2396  ;;  %v1501_v4 = vadd.f32 %v1500_v16, %v1452_v15  ;;  %v1373_v17 = vpop.f32.mrf.mxu0 }
 0x18b   : > { %1593 = vmatmul.f32.gmra.mxu0 %v2397_v18  ;;  %v1374_v9 = vadd.f32 %v1373_v17, %v2925_v1 }
 0x18c   : > { %2398 = vtanh.f32 %v1501_v4 }
 0x18e   : > { %v1454_v45 = vpop.f32.mrf.mxu2 }
 0x18f   : > { %v1455_v21 = vadd.f32 %v1454_v45, %v1406_v19 }
 0x190   : > { %v1407_v25 = vpop.f32.mrf.mxu1 }
 0x191   : > { %v1503_v22 = vpop.f32.mrf.mxu3  ;;  %v1408_v29 = vadd.f32 %v1407_v25, %v1359_v27 }
 0x192   : > { %v2399_v23 = vpop.eup %2398  ;;  %v1504_v49 = vadd.f32 %v1503_v22, %v1455_v21 }
 0x193   : > { %1596 = vmatmul.f32.gmra.mxu0 %v2399_v23  ;;  %v2383_v23 = vld [vmem:[%s2991_s4] ss:$0 sm:$0xff] }
 0x194   : > { %2400 = vtanh.f32 %v1504_v49 }
 0x196   : > { %v1456_v59 = vpop.f32.mrf.mxu2 }
 0x197   : > { %v1457_v30 = vadd.f32 %v1456_v59, %v1408_v29 }
 0x198   : > { %v1410_v47 = vpop.f32.mrf.mxu1 }
 0x199   : > { %v1505_v40 = vpop.f32.mrf.mxu3  ;;  %v1411_v37 = vadd.f32 %v1410_v47, %v1362_v34 }
 0x19a   : > { %v2401_v31 = vpop.eup %2400  ;;  %v1506_v33 = vadd.f32 %v1505_v40, %v1457_v30 }
 0x19b   : > { %1599 = vmatmul.f32.gmra.mxu0 %v2401_v31 }
 0x19c   : > { %2402 = vtanh.f32 %v1506_v33 }
 0x19e   : > { %v1459_v7 = vpop.f32.mrf.mxu2 }
 0x19f   : > { %v1460_v38 = vadd.f32 %v1459_v7, %v1411_v37 }
 0x1a0   : > { %v1412_v41 = vpop.f32.mrf.mxu1 }
 0x1a1   : > { %v1508_v39 = vpop.f32.mrf.mxu3  ;;  %v1413_v46 = vadd.f32 %v1412_v41, %v1364_v44 }
 0x1a2   : > { %v2403_v42 = vpop.eup %2402  ;;  %v1509_v58 = vadd.f32 %v1508_v39, %v1460_v38 }
 0x1a3   : > { %1602 = vmatmul.f32.gmra.mxu0 %v2403_v42 }
 0x1a4   : > { %2404 = vtanh.f32 %v1509_v58 }
 0x1a6   : > { %v1461_v48 = vpop.f32.mrf.mxu2 }
 0x1a7   : > { %v1462_v28 = vadd.f32 %v1461_v48, %v1413_v46 }
 0x1a8   : > { %v1415_v51 = vpop.f32.mrf.mxu1 }
 0x1a9   : > { %v1510_v50 = vpop.f32.mrf.mxu3  ;;  %v1416_v56 = vadd.f32 %v1415_v51, %v1367_v53 }
 0x1aa   : > { %v2405_v52 = vpop.eup %2404  ;;  %v1511_v61 = vadd.f32 %v1510_v50, %v1462_v28 }
 0x1ab   : > { %1605 = vmatmul.f32.gmra.mxu0 %v2405_v52 }
 0x1ac   : > { %2406 = vtanh.f32 %v1511_v61 }
 0x1ae   : > { %v1464_v60 = vpop.f32.mrf.mxu2 }
 0x1af   : > { %v1465_v63 = vadd.f32 %v1464_v60, %v1416_v56 }
 0x1b0   : > { %v1417_v6 = vpop.f32.mrf.mxu1 }
 0x1b1   : > { %v1513_v36 = vpop.f32.mrf.mxu3  ;;  %v1418_v2 = vadd.f32 %v1417_v6, %v1369_v8 }
 0x1b2   : > { %v2407_v0 = vpop.eup %2406  ;;  %v1514_v20 = vadd.f32 %v1513_v36, %v1465_v63 }
 0x1b3   : > { %1608 = vmatmul.f32.gmra.mxu0 %v2407_v0 }
 0x1b4   : > { %2408 = vtanh.f32 %v1514_v20 }
 0x1b6   : > { %v1466_v5 = vpop.f32.mrf.mxu2 }
 0x1b7   : > { %v1467_v10 = vadd.f32 %v1466_v5, %v1418_v2 }
 0x1b8   : > { %v1420_v57 = vpop.f32.mrf.mxu1 }
 0x1b9   : > { %v1515_v11 = vpop.f32.mrf.mxu3  ;;  %v1421_v14 = vadd.f32 %v1420_v57, %v1372_v13 }
 0x1ba   : > { %v2409_v26 = vpop.eup %2408  ;;  %v1516_v12 = vadd.f32 %v1515_v11, %v1467_v10 }
 0x1bb   : > { %1611 = vmatmul.f32.gmra.mxu0 %v2409_v26 }
 0x1bc   : > { %2410 = vtanh.f32 %v1516_v12 }
 0x1be   : > { %v1469_v24 = vpop.f32.mrf.mxu2 }
 0x1bf   : > { %v1470_v15 = vadd.f32 %v1469_v24, %v1421_v14 }
 0x1c0   : > { %v1422_v4 = vpop.f32.mrf.mxu1 }
 0x1c1   : > { %v1518_v16 = vpop.f32.mrf.mxu3  ;;  %v1423_v19 = vadd.f32 %v1422_v4, %v1374_v9 }
 0x1c2   : > { %v2411_v18 = vpop.eup %2410  ;;  %v1519_v62 = vadd.f32 %v1518_v16, %v1470_v15 }
 0x1c3   : > { %1614 = vmatmul.f32.gmra.mxu0 %v2411_v18 }
 0x1c4   : > { %2412 = vtanh.f32 %v1519_v62 }
 0x1c6   : > { %v1471_v35 = vpop.f32.mrf.mxu2 }
 0x1c7   : > { %v1472_v45 = vadd.f32 %v1471_v35, %v1423_v19 }
 0x1c9   : > { %v1520_v21 = vpop.f32.mrf.mxu3 }
 0x1ca   : > { %v2413_v22 = vpop.eup %2412  ;;  %v1521_v54 = vadd.f32 %v1520_v21, %v1472_v45 }
 0x1cb   : > { %1617 = vmatmul.f32.gmra.mxu0 %v2413_v22 }
 0x1cc   : > { %2414 = vtanh.f32 %v1521_v54 }
 0x1d2   : > { %v2415_v25 = vpop.eup %2414 }
 0x1d3   : > { %1620 = vmatmul.f32.gmra.mxu0 %v2415_v25 }
 0x1d8   : > { %v1576_v1 = vpop.f32.mrf.mxu0 }
 0x1d9   : > { %v1577_v49 = vadd.f32 %v2383_v23, %v1576_v1 }
 0x1db   : > { %1625 = vst.msk [vmem:[%s2950_s11] sm:$0xff] %vm1624_vm0, %v1577_v49 }
 0x1e0   : > { %v1579_v27 = vpop.f32.mrf.mxu0 }
 0x1e1   : > { %v1580_v29 = vadd.f32 %v2383_v23, %v1579_v27 }
 0x1e3   : > { %1626 = vst.msk [vmem:[%s2950_s11 + $0x8] sm:$0xff] %vm1624_vm0, %v1580_v29 }
 0x1e8   : > { %v1582_v59 = vpop.f32.mrf.mxu0 }
 0x1e9   : > { %v1583_v30 = vadd.f32 %v2383_v23, %v1582_v59 }
 0x1eb   : > { %1627 = vst.msk [vmem:[%s2950_s11 + $0x10] sm:$0xff] %vm1624_vm0, %v1583_v30 }
 0x1f0   : > { %v1585_v40 = vpop.f32.mrf.mxu0 }
 0x1f1   : > { %v1586_v32 = vadd.f32 %v2383_v23, %v1585_v40 }
 0x1f3   : > { %1628 = vst.msk [vmem:[%s2950_s11 + $0x18] sm:$0xff] %vm1624_vm0, %v1586_v32 }
 0x1f8   : > { %v1588_v47 = vpop.f32.mrf.mxu0 }
 0x1f9   : > { %v1589_v31 = vadd.f32 %v2383_v23, %v1588_v47 }
 0x1fb   : > { %1629 = vst.msk [vmem:[%s2950_s11 + $0x20] sm:$0xff] %vm1624_vm0, %v1589_v31 }
 0x200   : > { %v1591_v33 = vpop.f32.mrf.mxu0 }
 0x201   : > { %v1592_v34 = vadd.f32 %v2383_v23, %v1591_v33 }
 0x203   : > { %1630 = vst.msk [vmem:[%s2950_s11 + $0x28] sm:$0xff] %vm1624_vm0, %v1592_v34 }
 0x208   : > { %v1594_v37 = vpop.f32.mrf.mxu0 }
 0x209   : > { %v1595_v7 = vadd.f32 %v2383_v23, %v1594_v37 }
 0x20b   : > { %1631 = vst.msk [vmem:[%s2950_s11 + $0x30] sm:$0xff] %vm1624_vm0, %v1595_v7 }
 0x210   : > { %v1597_v38 = vpop.f32.mrf.mxu0 }
 0x211   : > { %v1598_v39 = vadd.f32 %v2383_v23, %v1597_v38 }
 0x213   : > { %1632 = vst.msk [vmem:[%s2950_s11 + $0x38] sm:$0xff] %vm1624_vm0, %v1598_v39 }
 0x218   : > { %v1600_v41 = vpop.f32.mrf.mxu0 }
 0x219   : > { %v1601_v42 = vadd.f32 %v2383_v23, %v1600_v41 }
 0x21b   : > { %1633 = vst.msk [vmem:[%s2950_s11 + $0x40] sm:$0xff] %vm1624_vm0, %v1601_v42 }
 0x220   : > { %v1603_v58 = vpop.f32.mrf.mxu0 }
 0x221   : > { %v1604_v43 = vadd.f32 %v2383_v23, %v1603_v58 }
 0x223   : > { %1634 = vst.msk [vmem:[%s2950_s11 + $0x48] sm:$0xff] %vm1624_vm0, %v1604_v43 }
 0x228   : > { %v1606_v44 = vpop.f32.mrf.mxu0 }
 0x229   : > { %v1607_v46 = vadd.f32 %v2383_v23, %v1606_v44 }
 0x22b   : > { %1635 = vst.msk [vmem:[%s2950_s11 + $0x50] sm:$0xff] %vm1624_vm0, %v1607_v46 }
 0x230   : > { %v1609_v48 = vpop.f32.mrf.mxu0 }
 0x231   : > { %v1610_v28 = vadd.f32 %v2383_v23, %v1609_v48 }
 0x233   : > { %1636 = vst.msk [vmem:[%s2950_s11 + $0x58] sm:$0xff] %vm1624_vm0, %v1610_v28 }
 0x238   : > { %v1612_v50 = vpop.f32.mrf.mxu0 }
 0x239   : > { %v1613_v51 = vadd.f32 %v2383_v23, %v1612_v50 }
 0x23b   : > { %1637 = vst.msk [vmem:[%s2950_s11 + $0x60] sm:$0xff] %vm1624_vm0, %v1613_v51 }
 0x240   : > { %v1615_v52 = vpop.f32.mrf.mxu0 }
 0x241   : > { %v1616_v61 = vadd.f32 %v2383_v23, %v1615_v52 }
 0x243   : > { %1638 = vst.msk [vmem:[%s2950_s11 + $0x68] sm:$0xff] %vm1624_vm0, %v1616_v61 }
 0x248   : > { %v1618_v53 = vpop.f32.mrf.mxu0 }
 0x249   : > { %v1619_v55 = vadd.f32 %v2383_v23, %v1618_v53 }
 0x24b   : > { %1639 = vst.msk [vmem:[%s2950_s11 + $0x70] sm:$0xff] %vm1624_vm0, %v1619_v55 }
 0x250   : > { %v1621_v56 = vpop.f32.mrf.mxu0 }
 0x251   : > { %v1622_v60 = vadd.f32 %v2383_v23, %v1621_v56 }
 0x253   : > { %1640 = vst.msk [vmem:[%s2950_s11 + $0x78] sm:$0xff] %vm1624_vm0, %v1622_v60 }
 0x254 PF: > { %s15_s18 = sadd.s32 1, %s2422_s18  }
 0x255   : > { %p12_p4 = scmp.ge.s32.totalorder %s15_s18, 6  }
 0x257   :  { %14 = sbr.rel (!%p12_p4) target bundleno = 1 (0x1), region = 70 }

</bundles_post_ra>
